<compile_context>
chip_gen: v6e
topology: v6e:2x2x1
jax: 0.10.0
libtpu: 0.0.40
codegen_flags: <defaults>
</compile_context>

<pallas_src>
import functools

import jax
import jax.numpy as jnp
from jax import lax
from jax.experimental import pallas as pl
from jax.experimental.pallas import tpu as pltpu

EPS = 1e-5


def _round_up(a, b):
    return (a + b - 1) // b * b


def _vmem_limit_bytes():
    """Per-generation VMEM budget (leave ~25% headroom for compiler scratch)."""
    cap = 64 * 1024 * 1024
    try:
        info = pltpu.get_tpu_info()
        cap = int(getattr(info, "vmem_capacity_bytes", cap) or cap)
    except Exception:
        pass
    return int(min(cap * 3 // 4, 112 * 1024 * 1024))


def _row_mask(a, start_row, n_valid):
    """Zero rows with global index >= n_valid (padded rows)."""
    rows = start_row + lax.broadcasted_iota(jnp.int32, (a.shape[0], 1), 0)
    return jnp.where(rows < n_valid, a, 0.0)


# ============================================================================
# Fused path: one pallas_call, grid = (3 phases, num_tiles), h1/h2 in VMEM scratch
# ============================================================================
def _fused_kernel(x_ref, w1_ref, w2_ref, w3_ref, b3_ref, o_ref,
                  h1_ref, h2_ref, st1_ref, st2_ref,
                  *, n_valid, tile, needs_mask, mxu_bf16, inter_dtype):
    p = pl.program_id(0)            # phase
    i = pl.program_id(1)            # batch tile
    inv_n = 1.0 / float(n_valid)
    off = pl.multiple_of(i * tile, 8)

    # ---- init stat accumulators ----
    @pl.when(jnp.logical_and(p == 0, i == 0))
    def _init():
        st1_ref[...] = jnp.zeros_like(st1_ref)
        st2_ref[...] = jnp.zeros_like(st2_ref)

    # ---- phase 0: h1 = x @ W1 (b1 cancelled by BN), accumulate BN1 sums ----
    @pl.when(p == 0)
    def _phase0():
        x = x_ref[...]
        if mxu_bf16:
            x = x.astype(jnp.bfloat16)
        h1 = jnp.dot(x, w1_ref[...], preferred_element_type=jnp.float32)
        h1_ref[pl.ds(off, tile), :] = h1.astype(inter_dtype)
        st1_ref[0:1, :] += jnp.sum(h1, axis=0, keepdims=True)
        st1_ref[1:2, :] += jnp.sum(h1 * h1, axis=0, keepdims=True)

    # ---- finalize BN1: sums -> (mean, rsqrt(var+eps)) ----
    @pl.when(jnp.logical_and(p == 1, i == 0))
    def _finalize_bn1():
        mu = st1_ref[0:1, :] * inv_n
        var = jnp.maximum(st1_ref[1:2, :] * inv_n - mu * mu, 0.0)
        st1_ref[0:1, :] = mu
        st1_ref[1:2, :] = lax.rsqrt(var + EPS)

    # ---- phase 1: a1 = BN1+ReLU, h2 = a1 @ W2 (b2 cancelled), accumulate BN2 sums ----
    @pl.when(p == 1)
    def _phase1():
        h1 = h1_ref[pl.ds(off, tile), :].astype(jnp.float32)
        a1 = jnp.maximum((h1 - st1_ref[0:1, :]) * st1_ref[1:2, :], 0.0)
        if needs_mask:
            a1 = _row_mask(a1, i * tile, n_valid)   # padded rows must not hit BN2 stats
        if mxu_bf16:
            a1 = a1.astype(jnp.bfloat16)
        h2 = jnp.dot(a1, w2_ref[...], preferred_element_type=jnp.float32)
        h2_ref[pl.ds(off, tile), :] = h2.astype(inter_dtype)
        st2_ref[0:1, :] += jnp.sum(h2, axis=0, keepdims=True)
        st2_ref[1:2, :] += jnp.sum(h2 * h2, axis=0, keepdims=True)

    # ---- finalize BN2 ----
    @pl.when(jnp.logical_and(p == 2, i == 0))
    def _finalize_bn2():
        mu = st2_ref[0:1, :] * inv_n
        var = jnp.maximum(st2_ref[1:2, :] * inv_n - mu * mu, 0.0)
        st2_ref[0:1, :] = mu
        st2_ref[1:2, :] = lax.rsqrt(var + EPS)

    # ---- phase 2: a2 = BN2+ReLU, y = a2 . w3 + b3 (VPU mul + lane reduce) ----
    @pl.when(p == 2)
    def _phase2():
        h2 = h2_ref[pl.ds(off, tile), :].astype(jnp.float32)
        a2 = jnp.maximum((h2 - st2_ref[0:1, :]) * st2_ref[1:2, :], 0.0)
        y = jnp.sum(a2 * w3_ref[...], axis=-1, keepdims=True) + b3_ref[0, 0]
        o_ref[...] = y                                   # (tile, 1): 4 B/row writeback


def _fused_forward(x_p, w1, w2, w3_row, b3, *, n_valid, tile, num_tiles,
                   mxu_bf16, inter_dtype, vmem_limit):
    n_pad, F = x_p.shape
    k = w1.shape[1]
    k2 = w2.shape[1]
    needs_mask = n_pad != n_valid

    kernel = functools.partial(
        _fused_kernel, n_valid=n_valid, tile=tile, needs_mask=needs_mask,
        mxu_bf16=mxu_bf16, inter_dtype=inter_dtype)

    return pl.pallas_call(
        kernel,
        out_shape=jax.ShapeDtypeStruct((n_pad, 1), jnp.float32),
        grid=(3, num_tiles),
        in_specs=[
            # x is only needed in phase 0; pin to block 0 afterwards (no re-fetch).
            pl.BlockSpec((tile, F), lambda p, i: (jnp.where(p == 0, i, 0), 0)),
            pl.BlockSpec((F, k), lambda p, i: (0, 0)),
            pl.BlockSpec((k, k2), lambda p, i: (0, 0)),
            pl.BlockSpec((1, k2), lambda p, i: (0, 0)),
            pl.BlockSpec(memory_space=pltpu.MemorySpace.SMEM),
        ],
        # Output only produced in phase 2; pin earlier phases to block 0 (single writeback).
        out_specs=pl.BlockSpec((tile, 1), lambda p, i: (jnp.where(p == 2, i, 0), 0)),
        scratch_shapes=[
            pltpu.VMEM((n_pad, k), inter_dtype),     # h1 (resident, never in HBM)
            pltpu.VMEM((n_pad, k2), inter_dtype),    # h2
            pltpu.VMEM((2, k), jnp.float32),         # BN1 sums -> (mu, rs)
            pltpu.VMEM((2, k2), jnp.float32),        # BN2 sums -> (mu, rs)
        ],
        compiler_params=pltpu.CompilerParams(
            dimension_semantics=("arbitrary", "arbitrary"),
            vmem_limit_bytes=vmem_limit,
        ),
    )(x_p, w1, w2, w3_row, b3)


# ============================================================================
# Fallback path for batches too large for VMEM-resident intermediates:
# 3 HBM-streaming passes with in-kernel stat accumulators (finalized to mu/rs).
# ============================================================================
def _pass1_kernel(x_ref, w1_ref, h1_ref, st1_ref, *, n_valid, mxu_bf16, inter_dtype):
    i = pl.program_id(0)
    inv_n = 1.0 / float(n_valid)

    @pl.when(i == 0)
    def _():
        st1_ref[...] = jnp.zeros_like(st1_ref)

    x = x_ref[...]
    if mxu_bf16:
        x = x.astype(jnp.bfloat16)
    h1 = jnp.dot(x, w1_ref[...], preferred_element_type=jnp.float32)
    h1_ref[...] = h1.astype(inter_dtype)
    st1_ref[0:1, :] += jnp.sum(h1, axis=0, keepdims=True)
    st1_ref[1:2, :] += jnp.sum(h1 * h1, axis=0, keepdims=True)

    @pl.when(i == pl.num_programs(0) - 1)
    def _():
        mu = st1_ref[0:1, :] * inv_n
        var = jnp.maximum(st1_ref[1:2, :] * inv_n - mu * mu, 0.0)
        st1_ref[0:1, :] = mu
        st1_ref[1:2, :] = lax.rsqrt(var + EPS)


def _pass2_kernel(h1_ref, st1_ref, w2_ref, h2_ref, st2_ref,
                  *, n_valid, tile, needs_mask, mxu_bf16, inter_dtype):
    i = pl.program_id(0)
    inv_n = 1.0 / float(n_valid)

    @pl.when(i == 0)
    def _():
        st2_ref[...] = jnp.zeros_like(st2_ref)

    h1 = h1_ref[...].astype(jnp.float32)
    a1 = jnp.maximum((h1 - st1_ref[0:1, :]) * st1_ref[1:2, :], 0.0)
    if needs_mask:
        a1 = _row_mask(a1, i * tile, n_valid)
    if mxu_bf16:
        a1 = a1.astype(jnp.bfloat16)
    h2 = jnp.dot(a1, w2_ref[...], preferred_element_type=jnp.float32)
    h2_ref[...] = h2.astype(inter_dtype)
    st2_ref[0:1, :] += jnp.sum(h2, axis=0, keepdims=True)
    st2_ref[1:2, :] += jnp.sum(h2 * h2, axis=0, keepdims=True)

    @pl.when(i == pl.num_programs(0) - 1)
    def _():
        mu = st2_ref[0:1, :] * inv_n
        var = jnp.maximum(st2_ref[1:2, :] * inv_n - mu * mu, 0.0)
        st2_ref[0:1, :] = mu
        st2_ref[1:2, :] = lax.rsqrt(var + EPS)


def _pass3_kernel(h2_ref, st2_ref, w3_ref, b3_ref, o_ref):
    h2 = h2_ref[...].astype(jnp.float32)
    a2 = jnp.maximum((h2 - st2_ref[0:1, :]) * st2_ref[1:2, :], 0.0)
    y = jnp.sum(a2 * w3_ref[...], axis=-1, keepdims=True) + b3_ref[0, 0]
    o_ref[...] = y


def _three_pass_forward(x_p, w1, w2, w3_row, b3, *, n_valid, tile, num_tiles,
                        mxu_bf16, inter_dtype, vmem_limit):
    n_pad, F = x_p.shape
    k = w1.shape[1]
    k2 = w2.shape[1]
    needs_mask = n_pad != n_valid
    cparams = pltpu.CompilerParams(
        dimension_semantics=("arbitrary",), vmem_limit_bytes=vmem_limit)
    smem_spec = pl.BlockSpec(memory_space=pltpu.MemorySpace.SMEM)

    # Pass 1: h1 (bf16 when mxu_bf16) + BN1 stats finalized in-kernel.
    h1, st1 = pl.pallas_call(
        functools.partial(_pass1_kernel, n_valid=n_valid,
                          mxu_bf16=mxu_bf16, inter_dtype=inter_dtype),
        out_shape=(jax.ShapeDtypeStruct((n_pad, k), inter_dtype),
                   jax.ShapeDtypeStruct((2, k), jnp.float32)),
        grid=(num_tiles,),
        in_specs=[pl.BlockSpec((tile, F), lambda i: (i, 0)),
                  pl.BlockSpec((F, k), lambda i: (0, 0))],
        out_specs=(pl.BlockSpec((tile, k), lambda i: (i, 0)),
                   pl.BlockSpec((2, k), lambda i: (0, 0))),
        compiler_params=cparams,
    )(x_p, w1)

    # Pass 2: a1 = BN1+ReLU, h2 = a1 @ W2, BN2 stats finalized in-kernel.
    h2, st2 = pl.pallas_call(
        functools.partial(_pass2_kernel, n_valid=n_valid, tile=tile,
                          needs_mask=needs_mask, mxu_bf16=mxu_bf16,
                          inter_dtype=inter_dtype),
        out_shape=(jax.ShapeDtypeStruct((n_pad, k2), inter_dtype),
                   jax.ShapeDtypeStruct((2, k2), jnp.float32)),
        grid=(num_tiles,),
        in_specs=[pl.BlockSpec((tile, k), lambda i: (i, 0)),
                  pl.BlockSpec((2, k), lambda i: (0, 0)),
                  pl.BlockSpec((k, k2), lambda i: (0, 0))],
        out_specs=(pl.BlockSpec((tile, k2), lambda i: (i, 0)),
                   pl.BlockSpec((2, k2), lambda i: (0, 0))),
        compiler_params=cparams,
    )(h1, st1, w2)

    # Pass 3: a2 = BN2+ReLU, output row-dot with w3 (VPU + lane reduce), narrow output.
    return pl.pallas_call(
        _pass3_kernel,
        out_shape=jax.ShapeDtypeStruct((n_pad, 1), jnp.float32),
        grid=(num_tiles,),
        in_specs=[pl.BlockSpec((tile, k2), lambda i: (i, 0)),
                  pl.BlockSpec((2, k2), lambda i: (0, 0)),
                  pl.BlockSpec((1, k2), lambda i: (0, 0)),
                  smem_spec],
        out_specs=pl.BlockSpec((tile, 1), lambda i: (i, 0)),
        compiler_params=cparams,
    )(h2, st2, w3_row, b3)


# ============================================================================
# Wrapper
# ============================================================================
def l1_regularized_nn_forward(x, params, *, tile_rows=2048, mxu_bf16=True,
                              max_resident_rows=None):
    """Forward pass. x: (N, F) float32. Returns (N, 1) float32.

    b1/b2 are exactly cancelled by train-mode BatchNorm and are not fed to the kernels.
    `max_resident_rows` (rows, padded) can force/disable the VMEM-resident fused path.
    """
    N, F = x.shape
    w1, w2 = params["w1"], params["w2"]
    k, k2 = w1.shape[1], w2.shape[1]
    w3_row = params["w3"].reshape(1, k2).astype(jnp.float32)
    b3 = params["b3"].reshape(1, 1).astype(jnp.float32)

    if mxu_bf16:
        # Pre-cast resident weight blocks once (halves weight DMA, no per-step VPU casts).
        w1 = w1.astype(jnp.bfloat16)
        w2 = w2.astype(jnp.bfloat16)
    inter_dtype = jnp.bfloat16 if mxu_bf16 else jnp.float32

    tile = max(8, min(int(tile_rows), _round_up(N, 8)))
    tile = _round_up(tile, 8)
    n_pad = _round_up(N, tile)
    num_tiles = n_pad // tile

    # NOTE: BN statistics rely on padded rows being ZERO.
    x_p = x if n_pad == N else jnp.pad(x, ((0, n_pad - N), (0, 0)))

    vmem_limit = _vmem_limit_bytes()

    # Conservative resident-footprint estimate: minor dims (k, k2 < 128) are padded to
    # 128 lanes in VMEM, so charge 2 * 128 lanes per row for h1+h2 scratch.
    itemsize = jnp.dtype(inter_dtype).itemsize
    resident_bytes = n_pad * 2 * 128 * itemsize
    if max_resident_rows is None:
        use_fused = resident_bytes <= vmem_limit // 2
    else:
        use_fused = n_pad <= int(max_resident_rows)

    common = dict(n_valid=N, tile=tile, num_tiles=num_tiles, mxu_bf16=mxu_bf16,
                  inter_dtype=inter_dtype, vmem_limit=vmem_limit)
    if use_fused:
        out = _fused_forward(x_p, w1, w2, w3_row, b3, **common)
    else:
        out = _three_pass_forward(x_p, w1, w2, w3_row, b3, **common)

    return out[:N]


# ============================================================================
# Parameters (fresh PyTorch module: Xavier-normal weights, zero biases) & reference
# ============================================================================
def init_params(key, input_features, k):
    def xavier_normal(key, fan_in, fan_out):
        std = (2.0 / (fan_in + fan_out)) ** 0.5
        return std * jax.random.normal(key, (fan_in, fan_out), dtype=jnp.float32)

    k1, k2_, k3 = jax.random.split(key, 3)
    return {
        "w1": xavier_normal(k1, input_features, k),
        "b1": jnp.zeros((1, k), jnp.float32),        # cancelled by train-mode BN
        "w2": xavier_normal(k2_, k, k // 2),
        "b2": jnp.zeros((1, k // 2), jnp.float32),   # cancelled by train-mode BN
        "w3": xavier_normal(k3, k // 2, 1),
        "b3": jnp.zeros((1, 1), jnp.float32),
    }


def reference_forward(x, params):
    """Pure-JAX reference of the PyTorch forward (train-mode BatchNorm1d)."""
    def bn(h):
        m = jnp.mean(h, axis=0, keepdims=True)
        v = jnp.mean((h - m) ** 2, axis=0, keepdims=True)
        return (h - m) / jnp.sqrt(v + EPS)

    hp = lax.Precision.HIGHEST
    h = jnp.dot(x, params["w1"], precision=hp) + params["b1"]
    h = jnp.maximum(bn(h), 0.0)
    h = jnp.dot(h, params["w2"], precision=hp) + params["b2"]
    h = jnp.maximum(bn(h), 0.0)
    return jnp.dot(h, params["w3"], precision=hp) + params["b3"]


if __name__ == "__main__":
    key = jax.random.PRNGKey(0)
    k_p, k_a, k_b, k_c = jax.random.split(key, 4)

    input_features, k = 16, 32
    params = init_params(k_p, input_features, k)

    # --- 1) Small batch: fused path, single tile ---
    x_small = jax.random.normal(k_a, (8, input_features), dtype=jnp.float32)
    ref_small = reference_forward(x_small, params)

    out = l1_regularized_nn_forward(x_small, params, mxu_bf16=False)
    jax.block_until_ready(out)
    assert out.shape == (8, 1), out.shape
    assert float(jnp.max(jnp.abs(out - ref_small))) < 2e-2

    out = l1_regularized_nn_forward(x_small, params, mxu_bf16=True)
    jax.block_until_ready(out)
    assert float(jnp.max(jnp.abs(out - ref_small))) < 0.15

    # --- 2) Multi-tile fused path with padded/masked last tile ---
    x_mid = jax.random.normal(k_b, (300, input_features), dtype=jnp.float32)
    ref_mid = reference_forward(x_mid, params)

    out = l1_regularized_nn_forward(x_mid, params, tile_rows=128, mxu_bf16=False)
    jax.block_until_ready(out)
    assert out.shape == (300, 1), out.shape
    assert float(jnp.max(jnp.abs(out - ref_mid))) < 2e-2

    out = l1_regularized_nn_forward(x_mid, params, tile_rows=128, mxu_bf16=True)
    jax.block_until_ready(out)
    assert float(jnp.max(jnp.abs(out - ref_mid))) < 0.15

    # --- 3) Forced 3-pass HBM-streaming fallback (large-N path) ---
    x_big = jax.random.normal(k_c, (20, input_features), dtype=jnp.float32)
    ref_big = reference_forward(x_big, params)

    out = l1_regularized_nn_forward(x_big, params, tile_rows=8, mxu_bf16=False,
                                    max_resident_rows=0)
    jax.block_until_ready(out)
    assert out.shape == (20, 1), out.shape
    assert float(jnp.max(jnp.abs(out - ref_big))) < 2e-2

    out = l1_regularized_nn_forward(x_big, params, tile_rows=8, mxu_bf16=True,
                                    max_resident_rows=0)
    jax.block_until_ready(out)
    assert float(jnp.max(jnp.abs(out - ref_big))) < 0.15

    print("KERNEL_OK")
</pallas_src>

<mosaic_0001>
module attributes {stable_mosaic.version = 11 : i64} {
  func.func @_fused_kernel(%arg0: i32, %arg1: i32, %arg2: memref<8x16xf32, #tpu.memory_space<vmem>>, %arg3: memref<16x32xf32, #tpu.memory_space<vmem>>, %arg4: memref<32x16xf32, #tpu.memory_space<vmem>>, %arg5: memref<1x16xf32, #tpu.memory_space<vmem>>, %arg6: memref<1x1xf32, #tpu.memory_space<smem>>, %arg7: memref<8x1xf32, #tpu.memory_space<vmem>>, %arg8: memref<8x32xf32, #tpu.memory_space<vmem>>, %arg9: memref<8x16xf32, #tpu.memory_space<vmem>>, %arg10: memref<2x32xf32, #tpu.memory_space<vmem>>, %arg11: memref<2x16xf32, #tpu.memory_space<vmem>>) attributes {dimension_semantics = [#tpu.dimension_semantics<arbitrary>, #tpu.dimension_semantics<arbitrary>], iteration_bounds = array<i64: 3, 1>, scalar_prefetch = 0 : i64, scratch_operands = 4 : i64, tpu.core_type = #tpu.core_type<tc>, window_params = [{transform_indices = @transform_0, window_bounds = array<i64: 8, 16>}, {pipeline_mode = #tpu.pipeline_mode<synchronous>, transform_indices = @transform_1, window_bounds = array<i64: 16, 32>}, {pipeline_mode = #tpu.pipeline_mode<synchronous>, transform_indices = @transform_2, window_bounds = array<i64: 32, 16>}, {pipeline_mode = #tpu.pipeline_mode<synchronous>, transform_indices = @transform_3, window_bounds = array<i64: 1, 16>}, {transform_indices = @transform_4, window_bounds = array<i64: 1, 1>}, {transform_indices = @transform_5, window_bounds = array<i64: 8, 1>}]} {
    %c8_i32 = arith.constant 8 : i32
    %0 = arith.muli %arg1, %c8_i32 : i32
    %1 = tpu.assume_multiple %0, 8 : i32
    %c0_i32 = arith.constant 0 : i32
    %2 = arith.cmpi eq, %arg0, %c0_i32 : i32
    %c0_i32_0 = arith.constant 0 : i32
    %3 = arith.cmpi eq, %arg1, %c0_i32_0 : i32
    %4 = arith.andi %2, %3 : i1
    %5 = arith.extui %4 : i1 to i32
    %c0_i32_1 = arith.constant 0 : i32
    %6 = arith.cmpi ne, %5, %c0_i32_1 : i32
    scf.if %6 {
      %cst = arith.constant 0.000000e+00 : f32
      %26 = vector.broadcast %cst : f32 to vector<2x32xf32>
      %c0 = arith.constant 0 : index
      %c0_12 = arith.constant 0 : index
      %27 = vector.load %arg10[%c0, %c0_12] : memref<2x32xf32, #tpu.memory_space<vmem>>, vector<2x32xf32>
      tpu.vector_store %arg10[%c0, %c0_12], %26 {strides = array<i32>} : memref<2x32xf32, #tpu.memory_space<vmem>>, vector<2x32xf32>,
      %cst_13 = arith.constant 0.000000e+00 : f32
      %28 = vector.broadcast %cst_13 : f32 to vector<2x16xf32>
      %c0_14 = arith.constant 0 : index
      %c0_15 = arith.constant 0 : index
      %29 = vector.load %arg11[%c0_14, %c0_15] : memref<2x16xf32, #tpu.memory_space<vmem>>, vector<2x16xf32>
      tpu.vector_store %arg11[%c0_14, %c0_15], %28 {strides = array<i32>} : memref<2x16xf32, #tpu.memory_space<vmem>>, vector<2x16xf32>,
    } else {
    }
    %c0_i32_2 = arith.constant 0 : i32
    %7 = arith.cmpi eq, %arg0, %c0_i32_2 : i32
    %8 = arith.extui %7 : i1 to i32
    %c0_i32_3 = arith.constant 0 : i32
    %9 = arith.cmpi ne, %8, %c0_i32_3 : i32
    scf.if %9 {
      %c0 = arith.constant 0 : index
      %c0_12 = arith.constant 0 : index
      %26 = vector.load %arg2[%c0, %c0_12] : memref<8x16xf32, #tpu.memory_space<vmem>>, vector<8x16xf32>
      %c0_13 = arith.constant 0 : index
      %c0_14 = arith.constant 0 : index
      %27 = vector.load %arg3[%c0_13, %c0_14] : memref<16x32xf32, #tpu.memory_space<vmem>>, vector<16x32xf32>
      %cst = arith.constant dense<0.000000e+00> : vector<8x32xf32>
      %28 = tpu.matmul %26, %27, %cst {dimension_numbers = #tpu.dot_dimension_numbers<[1], [0], [0], [1], [0, 0, 1, 1], [], []>} : vector<8x16xf32>, vector<16x32xf32>, vector<8x32xf32> -> vector<8x32xf32>
      %29 = arith.index_cast %1 : i32 to index
      %c0_15 = arith.constant 0 : index
      %30 = vector.load %arg8[%29, %c0_15] : memref<8x32xf32, #tpu.memory_space<vmem>>, vector<8x32xf32>
      tpu.vector_store %arg8[%29, %c0_15], %28 {strides = array<i32>} : memref<8x32xf32, #tpu.memory_space<vmem>>, vector<8x32xf32>,
      %c0_16 = arith.constant 0 : index
      %c0_17 = arith.constant 0 : index
      %31 = vector.load %arg10[%c0_16, %c0_17] : memref<2x32xf32, #tpu.memory_space<vmem>>, vector<1x32xf32>
      %cst_18 = arith.constant dense<0.000000e+00> : vector<32xf32>
      %32 = vector.multi_reduction <add>, %28, %cst_18 [0] : vector<8x32xf32> to vector<32xf32>
      %33 = vector.shape_cast %32 : vector<32xf32> to vector<1x32xf32>
      %34 = arith.addf %31, %33 : vector<1x32xf32>
      %c0_19 = arith.constant 0 : index
      %c0_20 = arith.constant 0 : index
      %35 = vector.load %arg10[%c0_19, %c0_20] : memref<2x32xf32, #tpu.memory_space<vmem>>, vector<1x32xf32>
      tpu.vector_store %arg10[%c0_19, %c0_20], %34 {strides = array<i32>} : memref<2x32xf32, #tpu.memory_space<vmem>>, vector<1x32xf32>,
      %c1 = arith.constant 1 : index
      %c0_21 = arith.constant 0 : index
      %36 = vector.load %arg10[%c1, %c0_21] : memref<2x32xf32, #tpu.memory_space<vmem>>, vector<1x32xf32>
      %37 = arith.mulf %28, %28 : vector<8x32xf32>
      %cst_22 = arith.constant dense<0.000000e+00> : vector<32xf32>
      %38 = vector.multi_reduction <add>, %37, %cst_22 [0] : vector<8x32xf32> to vector<32xf32>
      %39 = vector.shape_cast %38 : vector<32xf32> to vector<1x32xf32>
      %40 = arith.addf %36, %39 : vector<1x32xf32>
      %c1_23 = arith.constant 1 : index
      %c0_24 = arith.constant 0 : index
      %41 = vector.load %arg10[%c1_23, %c0_24] : memref<2x32xf32, #tpu.memory_space<vmem>>, vector<1x32xf32>
      tpu.vector_store %arg10[%c1_23, %c0_24], %40 {strides = array<i32>} : memref<2x32xf32, #tpu.memory_space<vmem>>, vector<1x32xf32>,
    } else {
    }
    %c1_i32 = arith.constant 1 : i32
    %10 = arith.cmpi eq, %arg0, %c1_i32 : i32
    %c0_i32_4 = arith.constant 0 : i32
    %11 = arith.cmpi eq, %arg1, %c0_i32_4 : i32
    %12 = arith.andi %10, %11 : i1
    %13 = arith.extui %12 : i1 to i32
    %c0_i32_5 = arith.constant 0 : i32
    %14 = arith.cmpi ne, %13, %c0_i32_5 : i32
    scf.if %14 {
      %c0 = arith.constant 0 : index
      %c0_12 = arith.constant 0 : index
      %26 = vector.load %arg10[%c0, %c0_12] : memref<2x32xf32, #tpu.memory_space<vmem>>, vector<1x32xf32>
      %cst = arith.constant 1.250000e-01 : f32
      %27 = vector.broadcast %cst : f32 to vector<1x32xf32>
      %28 = arith.mulf %26, %27 : vector<1x32xf32>
      %c1 = arith.constant 1 : index
      %c0_13 = arith.constant 0 : index
      %29 = vector.load %arg10[%c1, %c0_13] : memref<2x32xf32, #tpu.memory_space<vmem>>, vector<1x32xf32>
      %cst_14 = arith.constant 1.250000e-01 : f32
      %30 = vector.broadcast %cst_14 : f32 to vector<1x32xf32>
      %31 = arith.mulf %29, %30 : vector<1x32xf32>
      %32 = arith.mulf %28, %28 : vector<1x32xf32>
      %33 = arith.subf %31, %32 : vector<1x32xf32>
      %cst_15 = arith.constant 0.000000e+00 : f32
      %34 = vector.broadcast %cst_15 : f32 to vector<1x32xf32>
      %35 = arith.maximumf %33, %34 : vector<1x32xf32>
      %c0_16 = arith.constant 0 : index
      %c0_17 = arith.constant 0 : index
      %36 = vector.load %arg10[%c0_16, %c0_17] : memref<2x32xf32, #tpu.memory_space<vmem>>, vector<1x32xf32>
      tpu.vector_store %arg10[%c0_16, %c0_17], %28 {strides = array<i32>} : memref<2x32xf32, #tpu.memory_space<vmem>>, vector<1x32xf32>,
      %cst_18 = arith.constant 9.99999974E-6 : f32
      %37 = vector.broadcast %cst_18 : f32 to vector<1x32xf32>
      %38 = arith.addf %35, %37 : vector<1x32xf32>
      %39 = math.rsqrt %38 : vector<1x32xf32>
      %c1_19 = arith.constant 1 : index
      %c0_20 = arith.constant 0 : index
      %40 = vector.load %arg10[%c1_19, %c0_20] : memref<2x32xf32, #tpu.memory_space<vmem>>, vector<1x32xf32>
      tpu.vector_store %arg10[%c1_19, %c0_20], %39 {strides = array<i32>} : memref<2x32xf32, #tpu.memory_space<vmem>>, vector<1x32xf32>,
    } else {
    }
    %c1_i32_6 = arith.constant 1 : i32
    %15 = arith.cmpi eq, %arg0, %c1_i32_6 : i32
    %16 = arith.extui %15 : i1 to i32
    %c0_i32_7 = arith.constant 0 : i32
    %17 = arith.cmpi ne, %16, %c0_i32_7 : i32
    scf.if %17 {
      %26 = arith.index_cast %1 : i32 to index
      %c0 = arith.constant 0 : index
      %27 = vector.load %arg8[%26, %c0] : memref<8x32xf32, #tpu.memory_space<vmem>>, vector<8x32xf32>
      %c0_12 = arith.constant 0 : index
      %c0_13 = arith.constant 0 : index
      %28 = vector.load %arg10[%c0_12, %c0_13] : memref<2x32xf32, #tpu.memory_space<vmem>>, vector<1x32xf32>
      %29 = vector.broadcast %28 : vector<1x32xf32> to vector<8x32xf32>
      %30 = arith.subf %27, %29 : vector<8x32xf32>
      %c1 = arith.constant 1 : index
      %c0_14 = arith.constant 0 : index
      %31 = vector.load %arg10[%c1, %c0_14] : memref<2x32xf32, #tpu.memory_space<vmem>>, vector<1x32xf32>
      %32 = vector.broadcast %31 : vector<1x32xf32> to vector<8x32xf32>
      %33 = arith.mulf %30, %32 : vector<8x32xf32>
      %cst = arith.constant 0.000000e+00 : f32
      %34 = vector.broadcast %cst : f32 to vector<8x32xf32>
      %35 = arith.maximumf %33, %34 : vector<8x32xf32>
      %c0_15 = arith.constant 0 : index
      %c0_16 = arith.constant 0 : index
      %36 = vector.load %arg4[%c0_15, %c0_16] : memref<32x16xf32, #tpu.memory_space<vmem>>, vector<32x16xf32>
      %cst_17 = arith.constant dense<0.000000e+00> : vector<8x16xf32>
      %37 = tpu.matmul %35, %36, %cst_17 {dimension_numbers = #tpu.dot_dimension_numbers<[1], [0], [0], [1], [0, 0, 1, 1], [], []>} : vector<8x32xf32>, vector<32x16xf32>, vector<8x16xf32> -> vector<8x16xf32>
      %38 = arith.index_cast %1 : i32 to index
      %c0_18 = arith.constant 0 : index
      %39 = vector.load %arg9[%38, %c0_18] : memref<8x16xf32, #tpu.memory_space<vmem>>, vector<8x16xf32>
      tpu.vector_store %arg9[%38, %c0_18], %37 {strides = array<i32>} : memref<8x16xf32, #tpu.memory_space<vmem>>, vector<8x16xf32>,
      %c0_19 = arith.constant 0 : index
      %c0_20 = arith.constant 0 : index
      %40 = vector.load %arg11[%c0_19, %c0_20] : memref<2x16xf32, #tpu.memory_space<vmem>>, vector<1x16xf32>
      %cst_21 = arith.constant dense<0.000000e+00> : vector<16xf32>
      %41 = vector.multi_reduction <add>, %37, %cst_21 [0] : vector<8x16xf32> to vector<16xf32>
      %42 = vector.shape_cast %41 : vector<16xf32> to vector<1x16xf32>
      %43 = arith.addf %40, %42 : vector<1x16xf32>
      %c0_22 = arith.constant 0 : index
      %c0_23 = arith.constant 0 : index
      %44 = vector.load %arg11[%c0_22, %c0_23] : memref<2x16xf32, #tpu.memory_space<vmem>>, vector<1x16xf32>
      tpu.vector_store %arg11[%c0_22, %c0_23], %43 {strides = array<i32>} : memref<2x16xf32, #tpu.memory_space<vmem>>, vector<1x16xf32>,
      %c1_24 = arith.constant 1 : index
      %c0_25 = arith.constant 0 : index
      %45 = vector.load %arg11[%c1_24, %c0_25] : memref<2x16xf32, #tpu.memory_space<vmem>>, vector<1x16xf32>
      %46 = arith.mulf %37, %37 : vector<8x16xf32>
      %cst_26 = arith.constant dense<0.000000e+00> : vector<16xf32>
      %47 = vector.multi_reduction <add>, %46, %cst_26 [0] : vector<8x16xf32> to vector<16xf32>
      %48 = vector.shape_cast %47 : vector<16xf32> to vector<1x16xf32>
      %49 = arith.addf %45, %48 : vector<1x16xf32>
      %c1_27 = arith.constant 1 : index
      %c0_28 = arith.constant 0 : index
      %50 = vector.load %arg11[%c1_27, %c0_28] : memref<2x16xf32, #tpu.memory_space<vmem>>, vector<1x16xf32>
      tpu.vector_store %arg11[%c1_27, %c0_28], %49 {strides = array<i32>} : memref<2x16xf32, #tpu.memory_space<vmem>>, vector<1x16xf32>,
    } else {
    }
    %c2_i32 = arith.constant 2 : i32
    %18 = arith.cmpi eq, %arg0, %c2_i32 : i32
    %c0_i32_8 = arith.constant 0 : i32
    %19 = arith.cmpi eq, %arg1, %c0_i32_8 : i32
    %20 = arith.andi %18, %19 : i1
    %21 = arith.extui %20 : i1 to i32
    %c0_i32_9 = arith.constant 0 : i32
    %22 = arith.cmpi ne, %21, %c0_i32_9 : i32
    scf.if %22 {
      %c0 = arith.constant 0 : index
      %c0_12 = arith.constant 0 : index
      %26 = vector.load %arg11[%c0, %c0_12] : memref<2x16xf32, #tpu.memory_space<vmem>>, vector<1x16xf32>
      %cst = arith.constant 1.250000e-01 : f32
      %27 = vector.broadcast %cst : f32 to vector<1x16xf32>
      %28 = arith.mulf %26, %27 : vector<1x16xf32>
      %c1 = arith.constant 1 : index
      %c0_13 = arith.constant 0 : index
      %29 = vector.load %arg11[%c1, %c0_13] : memref<2x16xf32, #tpu.memory_space<vmem>>, vector<1x16xf32>
      %cst_14 = arith.constant 1.250000e-01 : f32
      %30 = vector.broadcast %cst_14 : f32 to vector<1x16xf32>
      %31 = arith.mulf %29, %30 : vector<1x16xf32>
      %32 = arith.mulf %28, %28 : vector<1x16xf32>
      %33 = arith.subf %31, %32 : vector<1x16xf32>
      %cst_15 = arith.constant 0.000000e+00 : f32
      %34 = vector.broadcast %cst_15 : f32 to vector<1x16xf32>
      %35 = arith.maximumf %33, %34 : vector<1x16xf32>
      %c0_16 = arith.constant 0 : index
      %c0_17 = arith.constant 0 : index
      %36 = vector.load %arg11[%c0_16, %c0_17] : memref<2x16xf32, #tpu.memory_space<vmem>>, vector<1x16xf32>
      tpu.vector_store %arg11[%c0_16, %c0_17], %28 {strides = array<i32>} : memref<2x16xf32, #tpu.memory_space<vmem>>, vector<1x16xf32>,
      %cst_18 = arith.constant 9.99999974E-6 : f32
      %37 = vector.broadcast %cst_18 : f32 to vector<1x16xf32>
      %38 = arith.addf %35, %37 : vector<1x16xf32>
      %39 = math.rsqrt %38 : vector<1x16xf32>
      %c1_19 = arith.constant 1 : index
      %c0_20 = arith.constant 0 : index
      %40 = vector.load %arg11[%c1_19, %c0_20] : memref<2x16xf32, #tpu.memory_space<vmem>>, vector<1x16xf32>
      tpu.vector_store %arg11[%c1_19, %c0_20], %39 {strides = array<i32>} : memref<2x16xf32, #tpu.memory_space<vmem>>, vector<1x16xf32>,
    } else {
    }
    %c2_i32_10 = arith.constant 2 : i32
    %23 = arith.cmpi eq, %arg0, %c2_i32_10 : i32
    %24 = arith.extui %23 : i1 to i32
    %c0_i32_11 = arith.constant 0 : i32
    %25 = arith.cmpi ne, %24, %c0_i32_11 : i32
    scf.if %25 {
      %26 = arith.index_cast %1 : i32 to index
      %c0 = arith.constant 0 : index
      %27 = vector.load %arg9[%26, %c0] : memref<8x16xf32, #tpu.memory_space<vmem>>, vector<8x16xf32>
      %c0_12 = arith.constant 0 : index
      %c0_13 = arith.constant 0 : index
      %28 = vector.load %arg11[%c0_12, %c0_13] : memref<2x16xf32, #tpu.memory_space<vmem>>, vector<1x16xf32>
      %29 = vector.broadcast %28 : vector<1x16xf32> to vector<8x16xf32>
      %30 = arith.subf %27, %29 : vector<8x16xf32>
      %c1 = arith.constant 1 : index
      %c0_14 = arith.constant 0 : index
      %31 = vector.load %arg11[%c1, %c0_14] : memref<2x16xf32, #tpu.memory_space<vmem>>, vector<1x16xf32>
      %32 = vector.broadcast %31 : vector<1x16xf32> to vector<8x16xf32>
      %33 = arith.mulf %30, %32 : vector<8x16xf32>
      %cst = arith.constant 0.000000e+00 : f32
      %34 = vector.broadcast %cst : f32 to vector<8x16xf32>
      %35 = arith.maximumf %33, %34 : vector<8x16xf32>
      %c0_15 = arith.constant 0 : index
      %c0_16 = arith.constant 0 : index
      %36 = vector.load %arg5[%c0_15, %c0_16] : memref<1x16xf32, #tpu.memory_space<vmem>>, vector<1x16xf32>
      %37 = vector.broadcast %36 : vector<1x16xf32> to vector<8x16xf32>
      %38 = arith.mulf %35, %37 : vector<8x16xf32>
      %cst_17 = arith.constant dense<0.000000e+00> : vector<8xf32>
      %39 = vector.multi_reduction <add>, %38, %cst_17 [1] : vector<8x16xf32> to vector<8xf32>
      %40 = vector.shape_cast %39 : vector<8xf32> to vector<8x1xf32>
      %c0_18 = arith.constant 0 : index
      %c0_19 = arith.constant 0 : index
      %41 = memref.load %arg6[%c0_18, %c0_19] : memref<1x1xf32, #tpu.memory_space<smem>>
      %42 = vector.broadcast %41 : f32 to vector<8x1xf32>
      %43 = arith.addf %40, %42 : vector<8x1xf32>
      %c0_20 = arith.constant 0 : index
      %c0_21 = arith.constant 0 : index
      %44 = vector.load %arg7[%c0_20, %c0_21] : memref<8x1xf32, #tpu.memory_space<vmem>>, vector<8x1xf32>
      tpu.vector_store %arg7[%c0_20, %c0_21], %43 {strides = array<i32>} : memref<8x1xf32, #tpu.memory_space<vmem>>, vector<8x1xf32>,
    } else {
    }
    return
  }
  func.func @transform_0(%arg0: i32, %arg1: i32) -> (i32, i32) {
    %c0_i32 = arith.constant 0 : i32
    %0 = arith.cmpi eq, %arg0, %c0_i32 : i32
    %c0_i32_0 = arith.constant 0 : i32
    %1 = arith.select %0, %arg1, %c0_i32_0 : i32
    %c0_i32_1 = arith.constant 0 : i32
    %c0_i32_2 = arith.constant 0 : i32
    return %1, %c0_i32_1 : i32, i32
  }
  func.func @transform_1(%arg0: i32, %arg1: i32) -> (i32, i32) {
    %c0_i32 = arith.constant 0 : i32
    %c0_i32_0 = arith.constant 0 : i32
    %c0_i32_1 = arith.constant 0 : i32
    return %c0_i32, %c0_i32_0 : i32, i32
  }
  func.func @transform_2(%arg0: i32, %arg1: i32) -> (i32, i32) {
    %c0_i32 = arith.constant 0 : i32
    %c0_i32_0 = arith.constant 0 : i32
    %c0_i32_1 = arith.constant 0 : i32
    return %c0_i32, %c0_i32_0 : i32, i32
  }
  func.func @transform_3(%arg0: i32, %arg1: i32) -> (i32, i32) {
    %c0_i32 = arith.constant 0 : i32
    %c0_i32_0 = arith.constant 0 : i32
    %c0_i32_1 = arith.constant 0 : i32
    return %c0_i32, %c0_i32_0 : i32, i32
  }
  func.func @transform_4(%arg0: i32, %arg1: i32) -> (i32, i32) {
    %c0_i32 = arith.constant 0 : i32
    %c0_i32_0 = arith.constant 0 : i32
    %c0_i32_1 = arith.constant 0 : i32
    return %c0_i32, %c0_i32_0 : i32, i32
  }
  func.func @transform_5(%arg0: i32, %arg1: i32) -> (i32, i32) {
    %c2_i32 = arith.constant 2 : i32
    %0 = arith.cmpi eq, %arg0, %c2_i32 : i32
    %c0_i32 = arith.constant 0 : i32
    %1 = arith.select %0, %arg1, %c0_i32 : i32
    %c0_i32_0 = arith.constant 0 : i32
    %c0_i32_1 = arith.constant 0 : i32
    return %1, %c0_i32_0 : i32, i32
  }
}

</mosaic_0001>

<bundles_post_ra>
// kernel: tpu_custom_call.1
= control target key start
LH: loop header
LB: loop body
LE: loop exit
PB: predicated region body
PF: predicated region fallthrough
CT: control target
= control target key end

     0   :  { %s786_s20 = smov 0   ;;  %s788_s21 = smov 0   ;;  %s848_s0 = inlined_call_operand.vmem [shape: f32[8,16], index: 0, kind: input, shape index: {}]   ;;  %s849_s1 = inlined_call_operand.vmem [shape: f32[16,32], index: 1, kind: input, shape index: {}]   ;;  %s850_s2 = inlined_call_operand.vmem [shape: f32[32,16], index: 2, kind: input, shape index: {}]   ;;  %s851_s3 = inlined_call_operand.vmem [shape: f32[1,16], index: 3, kind: input, shape index: {}]   ;;  %s852_s4 = inlined_call_operand.<no memory space> [shape: f32[1,1], index: 4, kind: input, shape index: {}]   ;;  %s853_s5 = inlined_call_operand.vmem [shape: f32[8,1], index: 5, kind: output, shape index: {}]  }
   0x1   :  { %10 = sst [smem:[#allocation6]] %s852_s4  ;;  %s790_s22 = smov 0  }
   0x2 LB: > { %s28_s4 = sadd.s32 1, %s742_s21  ;;  %p644_p0 = scmp.ge.s32.totalorder %s746_s22, 1  ;;  %s746_s22 = sphi %s790_s22, %s16_s22   ;;  %s742_s21 = sphi %s788_s21, %s855_s21   ;;  %s738_s20 = sphi %s786_s20, %s854_s20  }
   0x3   : > { %p30_p1 = scmp.ge.s32.totalorder %s28_s4, 3  ;;  %p211_p2 = scmp.lt.s32.totalorder %s746_s22, 4 }
   0x5   : > { %s857_s4 = smov (%p30_p1, %s28_s4), 0  ;;  %p212_p3 = pnand %p644_p0, %p211_p2 }
   0x6   : > { %p258_p4 = scmp.eq.s32.totalorder (!%p212_p3), %s738_s20, 0 }
   0x7   : > { %215 = sbr.rel (%p212_p3) target bundleno = 685 (0x2ad), region = 40 }
   0xc   : > { %263 = sbr.rel (!%p258_p4) target bundleno = 17 (0x11), region = 44  ;;  %vm264_vm0 = vcmask (%p258_p4), 254976   ;;  %vm266_vm1 = vcmask (%p258_p4), 123904   ;;  %v748_v0 = vmov (%p258_p4), 0.0  }
   0xd   : > { %265 = vst.msk [vmem:[#allocation4] sm:$0x3] (%p258_p4), %vm264_vm0, %v748_v0 }
   0xe   : > { %267 = vst.msk [vmem:[#allocation5] sm:$0x3] (%p258_p4), %vm266_vm1, %v748_v0 }
  0x11 PF: > { %p646_p5 = scmp.ne.s32.totalorder %s738_s20, 0 }
  0x13   : > { %270 = sbr.rel (%p646_p5) target bundleno = 240 (0xf0), region = 48 }
  0x18   : > { %v273_v1 = vld [vmem:[%s849_s1 + $0x8] sm:$0xff]  ;;  %v749_v2 = vmov 0.0   ;;  %v272_v3 = vld [vmem:[%s849_s1] sm:$0xff]  ;;  %vm750_vm2 = vmmov 0   ;;  %vm274_vm3 = vcmask 130048   ;;  %vm349_vm4 = vcmask 261120  }
  0x19   : > { %673 = vmatprep.subr.mxu0 %v749_v2  ;;  %677 = vmatprep.mubr.msk.f32.mxu0 %vm750_vm2, %v749_v2  ;;  %v271_v4 = vld [vmem:[%s848_s0] sm:$0xff]  ;;  %v351_v19 = vld [vmem:[#allocation4] sm:$0x1]  ;;  %vm360_vm5 = vcmask 253952   ;;  %v362_v22 = vld [vmem:[#allocation4 + $0x1] sm:$0x1] }
  0x1a   : > { %674 = vmatpush3.msra.mxu0 %v273_v1 }
  0x1b   : > { %675 = vmatprep.subr.mxu0 %v749_v2 }
  0x1c   : > { %676 = vmatpush3.msra.mxu0 %v272_v3 }
  0x1d   : > { %678 = vmatmul.mubr.msk.f32.vlgmr.msra.gmra.mxu0 %vm274_vm3, %v271_v4 }
  0xdd   : > { %v344_v5 = vpop.f32.mrf.mxu0 }
  0xde   : > { %350 = vst.msk [vmem:[#allocation2] sm:$0xff] %vm349_vm4, %v344_v5  ;;  %v352_v6 = vsel %vm349_vm4, %v344_v5, 0.0  ;;  %v363_v7 = vmul.f32 %v344_v5, %v344_v5 }
  0xdf   : > { %v353_v8 = vrot.slane %v352_v6, 4  ;;  %v679_v9 = vpop.f32.mrf.mxu0 }
  0xe0   : > { %v364_v10 = vsel %vm349_vm4, %v363_v7, 0.0 }
  0xe1   : > { %v354_v11 = vadd.f32 %v353_v8, %v352_v6  ;;  %v365_v12 = vrot.slane %v364_v10, 4 }
  0xe3   : > { %v355_v13 = vrot.slane %v354_v11, 2  ;;  %v366_v14 = vadd.f32 %v365_v12, %v364_v10 }
  0xe5   : > { %v356_v15 = vadd.f32 %v355_v13, %v354_v11  ;;  %v367_v16 = vrot.slane %v366_v14, 2 }
  0xe7   : > { %v357_v17 = vrot.slane %v356_v15, 1  ;;  %v368_v18 = vadd.f32 %v367_v16, %v366_v14 }
  0xe9   : > { %v358_v20 = vadd.f32 %v357_v17, %v356_v15  ;;  %v369_v21 = vrot.slane %v368_v18, 1 }
  0xeb   : > { %v359_v23 = vadd.f32 %v358_v20, %v351_v19  ;;  %v370_v24 = vadd.f32 %v369_v21, %v368_v18 }
  0xed   : > { %361 = vst.msk [vmem:[#allocation4] sm:$0x1] %vm360_vm5, %v359_v23  ;;  %v371_v25 = vadd.f32 %v370_v24, %v362_v22 }
  0xef   : > { %372 = vst.msk [vmem:[#allocation4 + $0x1] sm:$0x1] %vm360_vm5, %v371_v25 }
  0xf0 PF: > { %p373_p6 = scmp.eq.s32.totalorder %s738_s20, 1 }
  0xf1   : > { %vm385_vm6 = vcmask (%p373_p6), 253952  }
  0xf2   : > { %377 = sbr.rel (!%p373_p6) target bundleno = 270 (0x10e), region = 52 }
  0xf4   : > { %v378_v26 = vld [vmem:[#allocation4] sm:$0x1] (%p373_p6) }
  0xf5   : > { %v379_v28 = vmul.f32 (%p373_p6), 0.125, %v378_v26 }
  0xf6   : > { %v380_v27 = vld [vmem:[#allocation4 + $0x1] sm:$0x1] (%p373_p6) }
  0xf7   : > { %v381_v29 = vmul.f32 0.125, %v380_v27  ;;  %v382_v30 = vmul.f32 %v379_v28, %v379_v28  ;;  %386 = vst.msk [vmem:[#allocation4] sm:$0x1] %vm385_vm6, %v379_v28 }
  0xf9   : > { %v383_v31 = vsub.f32 %v381_v29, %v382_v30 }
  0xfb   : > { %v384_v32 = vmax.f32 %v383_v31, 0.0 }
  0xfd   : > { %v387_v33 = vadd.f32 1e-05, %v384_v32 }
  0xff   : > { %720 = vrsqrt.f32 %v387_v33 }
 0x10c   : > { %v721_v34 = vpop.eup %720 }
 0x10d   : > { %389 = vst.msk [vmem:[#allocation4 + $0x1] sm:$0x1] %vm385_vm6, %v721_v34 }
 0x10e PF: > { %p649_p7 = scmp.ne.s32.totalorder %s738_s20, 1 }
 0x110   : > { %392 = sbr.rel (%p649_p7) target bundleno = 497 (0x1f1), region = 56 }
 0x115   : > { %v411_v35 = vld [vmem:[%s850_s2 + $0x18] sm:$0xff]  ;;  %v751_v36 = vmov 0.0   ;;  %v410_v37 = vld [vmem:[%s850_s2 + $0x10] sm:$0xff]  ;;  %vm752_vm7 = vmmov 0   ;;  %v394_v38 = vld [vmem:[#allocation2] sm:$0xff]  ;;  %vm412_vm8 = vcmask 261120  }
 0x116   : > { %680 = vmatprep.subr.mxu0 %v751_v36  ;;  %688 = vmatprep.mubr.msk.f32.mxu0 %vm752_vm7, %v751_v36  ;;  %v650_v39 = vld [vmem:[#allocation4] ss:$0 sm:$0xff]  ;;  %v651_v41 = vld [vmem:[#allocation4 + $0x1] ss:$0 sm:$0xff]  ;;  %v409_v42 = vld [vmem:[%s850_s2 + $0x8] sm:$0xff]  ;;  %vm487_vm9 = vcmask 130048  }
 0x117   : > { %681 = vmatpush3.msra.mxu0 %v411_v35  ;;  %v400_v40 = vsub.f32 %v394_v38, %v650_v39  ;;  %v408_v44 = vld [vmem:[%s850_s2] sm:$0xff]  ;;  %v489_v60 = vld [vmem:[#allocation5] sm:$0x1]  ;;  %vm498_vm10 = vcmask 122880   ;;  %v500_v63 = vld [vmem:[#allocation5 + $0x1] sm:$0x1] }
 0x118   : > { %682 = vmatprep.subr.mxu0 %v751_v36 }
 0x119   : > { %683 = vmatpush3.msra.mxu0 %v410_v37  ;;  %v406_v43 = vmul.f32 %v651_v41, %v400_v40 }
 0x11a   : > { %684 = vmatprep.subr.mxu0 %v751_v36 }
 0x11b   : > { %685 = vmatpush3.msra.mxu0 %v409_v42  ;;  %v407_v45 = vmax.f32 %v406_v43, 0.0 }
 0x11c   : > { %686 = vmatprep.subr.mxu0 %v751_v36 }
 0x11d   : > { %687 = vmatpush3.msra.mxu0 %v408_v44 }
 0x11e   : > { %689 = vmatmul.mubr.msk.f32.vlgmr.msra.gmra.mxu0 %vm412_vm8, %v407_v45 }
 0x1de   : > { %v482_v46 = vpop.f32.mrf.mxu0 }
 0x1df   : > { %488 = vst.msk [vmem:[#allocation3] sm:$0xff] %vm487_vm9, %v482_v46  ;;  %v490_v47 = vsel %vm487_vm9, %v482_v46, 0.0  ;;  %v501_v48 = vmul.f32 %v482_v46, %v482_v46 }
 0x1e0   : > { %v491_v49 = vrot.slane %v490_v47, 4  ;;  %v690_v50 = vpop.f32.mrf.mxu0 }
 0x1e1   : > { %v502_v51 = vsel %vm487_vm9, %v501_v48, 0.0 }
 0x1e2   : > { %v492_v52 = vadd.f32 %v491_v49, %v490_v47  ;;  %v503_v53 = vrot.slane %v502_v51, 4 }
 0x1e4   : > { %v493_v54 = vrot.slane %v492_v52, 2  ;;  %v504_v55 = vadd.f32 %v503_v53, %v502_v51 }
 0x1e6   : > { %v494_v56 = vadd.f32 %v493_v54, %v492_v52  ;;  %v505_v57 = vrot.slane %v504_v55, 2 }
 0x1e8   : > { %v495_v58 = vrot.slane %v494_v56, 1  ;;  %v506_v59 = vadd.f32 %v505_v57, %v504_v55 }
 0x1ea   : > { %v496_v61 = vadd.f32 %v495_v58, %v494_v56  ;;  %v507_v62 = vrot.slane %v506_v59, 1 }
 0x1ec   : > { %v497_v0 = vadd.f32 %v496_v61, %v489_v60  ;;  %v508_v1 = vadd.f32 %v507_v62, %v506_v59 }
 0x1ee   : > { %499 = vst.msk [vmem:[#allocation5] sm:$0x1] %vm498_vm10, %v497_v0  ;;  %v509_v2 = vadd.f32 %v508_v1, %v500_v63 }
 0x1f0   : > { %510 = vst.msk [vmem:[#allocation5 + $0x1] sm:$0x1] %vm498_vm10, %v509_v2 }
 0x1f1 PF: > { %p511_p8 = scmp.eq.s32.totalorder %s738_s20, 2 }
 0x1f2   : > { %vm523_vm11 = vcmask (%p511_p8), 122880  }
 0x1f3   : > { %515 = sbr.rel (!%p511_p8) target bundleno = 527 (0x20f), region = 60 }
 0x1f5   : > { %v516_v3 = vld [vmem:[#allocation5] sm:$0x1] (%p511_p8) }
 0x1f6   : > { %v517_v5 = vmul.f32 (%p511_p8), 0.125, %v516_v3 }
 0x1f7   : > { %v518_v4 = vld [vmem:[#allocation5 + $0x1] sm:$0x1] (%p511_p8) }
 0x1f8   : > { %v519_v6 = vmul.f32 0.125, %v518_v4  ;;  %v520_v7 = vmul.f32 %v517_v5, %v517_v5  ;;  %524 = vst.msk [vmem:[#allocation5] sm:$0x1] %vm523_vm11, %v517_v5 }
 0x1fa   : > { %v521_v8 = vsub.f32 %v519_v6, %v520_v7 }
 0x1fc   : > { %v522_v9 = vmax.f32 %v521_v8, 0.0 }
 0x1fe   : > { %v525_v10 = vadd.f32 1e-05, %v522_v9 }
 0x200   : > { %722 = vrsqrt.f32 %v525_v10 }
 0x20d   : > { %v723_v11 = vpop.eup %722 }
 0x20e   : > { %527 = vst.msk [vmem:[#allocation5 + $0x1] sm:$0x1] %vm523_vm11, %v723_v11 }
 0x20f PF: > { %p654_p9 = scmp.ne.s32.totalorder %s738_s20, 2 }
 0x210   : > { %s558_s14 = sld [smem:[#allocation6]] (!%p654_p9) }
 0x211   : > { %530 = sbr.rel (%p654_p9) target bundleno = 685 (0x2ad), region = 64 }
 0x216   : > { %v532_v12 = vld [vmem:[#allocation3] sm:$0xff]  ;;  %v655_v13 = vld [vmem:[#allocation5] ss:$0 sm:$0xff]  ;;  %v656_v14 = vld [vmem:[#allocation5 + $0x1] ss:$0 sm:$0xff]  ;;  %vm554_vm12 = vcmask 130048   ;;  %v559_v21 = vstv %s558_s14 }
 0x217   : > { %v538_v15 = vsub.f32 %v532_v12, %v655_v13  ;;  %v657_v17 = vld [vmem:[%s851_s3] ss:$0 sm:$0xff]  ;;  %vm561_vm13 = vcmask 7168  }
 0x219   : > { %v544_v16 = vmul.f32 %v656_v14, %v538_v15 }
 0x21b   : > { %v545_v18 = vmax.f32 %v544_v16, 0.0 }
 0x21d   : > { %v553_v19 = vmul.f32 %v657_v17, %v545_v18 }
 0x21f   : > { %v555_v20 = vsel %vm554_vm12, %v553_v19, 0.0 }
 0x220   : > { %556 = vadd.xlane.f32.xlu0 %v555_v20 }
 0x2a9   : > { %v557_v22 = vpop.xlane.xlu0 %556 }
 0x2aa   : > { %v560_v23 = vadd.f32 %v559_v21, %v557_v22 }
 0x2ac   : > { %562 = vst.msk [vmem:[%s853_s5] sm:$0xff] %vm561_vm13, %v560_v23 }
 0x2ad PF: > { %s16_s22 = sadd.s32 1, %s746_s22   ;;  %s854_s20 = smov %s742_s21 }
 0x2ae   : > { %p13_p10 = scmp.ge.s32.totalorder %s16_s22, 5   ;;  %s855_s21 = smov %s857_s4 }
 0x2b0   :  { %15 = sbr.rel (!%p13_p10) target bundleno = 2 (0x2), region = 98 }

</bundles_post_ra>
